<compile_context>
chip_gen: v7x
topology: tpu7x:2x2x1
jax: 0.10.0
libtpu: 0.0.40
codegen_flags: <defaults>
</compile_context>

<pallas_src>
import functools

import jax
import jax.numpy as jnp
import numpy as np
from jax import lax
from jax.experimental import pallas as pl
from jax.experimental.pallas import tpu as pltpu

LANES = 128
MAX_BLK_ROWS = 4096   # 4096x128 f32 = 2 MiB per input per buffer -> 8 MiB double-buffered


def _focal_kernel(x_ref, t_ref, o_ref, *,
                  alpha_neg, alpha_pos, gamma, total_rows, blk_rows,
                  n_cores, need_mask, binary_targets):
    core = pl.program_id(0)                 # megacore split ("parallel")
    step = pl.program_id(1)                 # sequential block loop ("arbitrary")
    last_step = pl.num_programs(1) - 1

    # The (1, 8, 128) output block is resident across the whole step axis and is
    # used directly as this core's accumulator.
    @pl.when(step == 0)
    def _():
        o_ref[...] = jnp.zeros_like(o_ref)

    x = x_ref[...].astype(jnp.float32)
    t = t_ref[...].astype(jnp.float32)

    # BCE with PyTorch's log clamp at -100, written with one mul fewer:
    #   -(t*log(x) + (1-t)*log(1-x)) == -(log(1-x) + t*(log(x) - log(1-x)))
    log_x = jnp.maximum(jnp.log(x), -100.0)
    log_1mx = jnp.maximum(jnp.log(1.0 - x), -100.0)
    bce = -(log_1mx + t * (log_x - log_1mx))

    if binary_targets:
        # Exact for hard {0,1} targets; drops the EUP exp (matters on v7x / bf16).
        pt = jnp.where(t != 0.0, x, 1.0 - x)
    else:
        pt = jnp.exp(-bce)

    one_minus_pt = 1.0 - pt
    if gamma == 2.0:                        # default: avoid a transcendental pow
        mod = one_minus_pt * one_minus_pt
    elif gamma == 1.0:
        mod = one_minus_pt
    elif gamma == 0.0:
        mod = None
    else:
        # Clamp guards against (1 - pt) going ~-1e-6 from fp cancellation near x~1
        # (NaN for fractional gamma otherwise).
        mod = jnp.maximum(one_minus_pt, 0.0) ** gamma

    focal = bce if mod is None else mod * bce
    if alpha_pos != alpha_neg:
        focal = (alpha_neg + (alpha_pos - alpha_neg) * t) * focal
    # else: constant alpha is folded into the wrapper-side scale.

    def fold(v):
        # (blk_rows, 128) -> (1, 8, 128): pure VALU vreg adds, no XLU reduce.
        return jnp.sum(v.reshape(blk_rows // 8, 8, LANES), axis=0)[None]

    if need_mask:
        # Only the last step of each core can see a partial / phantom block;
        # every earlier step is a guaranteed-full block -> zero masking cost there.
        @pl.when(step != last_step)
        def _():
            o_ref[...] += fold(focal)

        @pl.when(step == last_step)
        def _():
            start = (step * n_cores + core) * blk_rows
            valid = lax.broadcasted_iota(jnp.int32, (blk_rows, LANES), 0) < (total_rows - start)
            o_ref[...] += fold(jnp.where(valid, focal, 0.0))
    else:
        o_ref[...] += fold(focal)


def focal_loss(inputs, targets, alpha=(0.5, 0.5), gamma=2.0, reduction='mean',
               binary_targets=False, max_blk_rows=MAX_BLK_ROWS):
    """Pallas implementation of FocalLoss.forward (reduction='mean' or 'sum')."""
    if reduction not in ('mean', 'sum'):
        # TODO(synk): reduction='none' (per-element output) not implemented as a Pallas kernel.
        raise NotImplementedError("Only 'mean' and 'sum' reductions are supported.")

    a_neg, a_pos = float(alpha[0]), float(alpha[1])
    gamma = float(gamma)

    x = jnp.reshape(inputs, (-1,))          # native dtype: no wrapper-side upcast copy
    t = jnp.reshape(targets, (-1,))
    n = x.shape[0]
    if n == 0:
        return jnp.float32(jnp.nan) if reduction == 'mean' else jnp.float32(0.0)

    # Pad only a ragged tail (< 128 elems); (x=0, t=0) pads contribute exactly 0 loss
    # and the mean uses the true n.  Common NCHW sizes hit the no-pad path.
    rem = n % LANES
    if rem:
        pad = LANES - rem
        x = jnp.pad(x, (0, pad))
        t = jnp.pad(t, (0, pad))
    rows = x.shape[0] // LANES
    x2 = x.reshape(rows, LANES)
    t2 = t.reshape(rows, LANES)

    # Row-block size: as large as useful, aligned to the sublane packing of the
    # narrowest input dtype (f32 -> 8 rows, bf16 -> 16, int8/fp8 -> 32).
    mult = max(8, max(8 * (4 // d.itemsize) for d in (x2.dtype, t2.dtype)))
    blk_rows = int(min(max_blk_rows, ((rows + mult - 1) // mult) * mult))
    n_blocks = pl.cdiv(rows, blk_rows)

    # Split the block loop across (up to) two TensorCores; interleaved assignment
    # (block = step * n_cores + core) keeps all partial/phantom blocks on the last step.
    n_cores = 2 if n_blocks >= 2 else 1
    steps = pl.cdiv(n_blocks, n_cores)
    phantom = n_cores * steps > n_blocks            # odd block count -> one clamped step
    need_mask = n_cores * steps * blk_rows > rows   # partial or phantom last step

    def in_index_map(c, s):
        blk = s * n_cores + c
        if phantom:
            blk = jnp.minimum(blk, n_blocks - 1)    # phantom step re-reads last real block (masked to 0)
        return (blk, 0)

    kernel = functools.partial(
        _focal_kernel,
        alpha_neg=a_neg, alpha_pos=a_pos, gamma=gamma,
        total_rows=rows, blk_rows=blk_rows, n_cores=n_cores,
        need_mask=need_mask, binary_targets=bool(binary_targets))

    in_bytes = 2 * blk_rows * LANES * (x2.dtype.itemsize + t2.dtype.itemsize)  # double-buffered inputs
    vmem_limit = int(min(64 * 1024 * 1024, max(16 * 1024 * 1024, 3 * in_bytes)))

    cost = pl.CostEstimate(
        flops=12 * n,
        transcendentals=(2 if binary_targets else 3) * n,
        bytes_accessed=n * (x2.dtype.itemsize + t2.dtype.itemsize) + n_cores * 8 * LANES * 4)

    out = pl.pallas_call(
        kernel,
        out_shape=jax.ShapeDtypeStruct((n_cores, 8, LANES), jnp.float32),
        grid_spec=pltpu.PrefetchScalarGridSpec(
            num_scalar_prefetch=0,
            grid=(n_cores, steps),
            in_specs=[
                pl.BlockSpec((blk_rows, LANES), in_index_map),
                pl.BlockSpec((blk_rows, LANES), in_index_map),
            ],
            out_specs=pl.BlockSpec((1, 8, LANES), lambda c, s: (c, 0, 0)),
        ),
        compiler_params=pltpu.CompilerParams(
            dimension_semantics=("parallel", "arbitrary"),
            vmem_limit_bytes=vmem_limit),
        cost_estimate=cost,
    )(x2, t2)

    # Tiny (n_cores * 8 * 128) final reduce in XLA; fold constant alpha + 1/n here.
    scale = a_neg if a_neg == a_pos else 1.0
    if reduction == 'mean':
        scale = scale / n
    return (jnp.sum(out) * jnp.float32(scale)).astype(jnp.float32)


def _reference(inputs, targets, alpha=(0.5, 0.5), gamma=2.0, reduction='mean'):
    x = jnp.reshape(inputs, (-1,)).astype(jnp.float32)
    t = jnp.reshape(targets, (-1,)).astype(jnp.float32)
    log_x = jnp.maximum(jnp.log(x), -100.0)
    log_1mx = jnp.maximum(jnp.log(1.0 - x), -100.0)
    bce = -(t * log_x + (1.0 - t) * log_1mx)
    pt = jnp.exp(-bce)
    alpha_t = alpha[1] * t + alpha[0] * (1.0 - t)
    focal = alpha_t * (1.0 - pt) ** gamma * bce
    return jnp.mean(focal) if reduction == 'mean' else jnp.sum(focal)


if __name__ == "__main__":
    key = jax.random.PRNGKey(0)
    k1, k2, k3, k4 = jax.random.split(key, 4)

    # Small NCHW probabilities + binary mask, consistent with the module's forward.
    inputs = jax.nn.sigmoid(jax.random.normal(k1, (2, 4, 16, 16), dtype=jnp.float32))
    targets = (jax.random.uniform(k2, (2, 4, 16, 16)) > 0.5).astype(jnp.float32)

    loss = jax.block_until_ready(focal_loss(inputs, targets))
    ref = jax.block_until_ready(_reference(inputs, targets))
    np.testing.assert_allclose(np.asarray(loss), np.asarray(ref), rtol=1e-5, atol=1e-6)

    # Robustness checks (still tiny): ragged tail + multi-block grid + 2-core split
    # + clamped phantom block + non-default alpha/gamma + 'sum' + binary-target fast path.
    xb = jax.nn.sigmoid(jax.random.normal(k3, (3, 5, 17, 19), dtype=jnp.float32))
    tb = (jax.random.uniform(k4, (3, 5, 17, 19)) > 0.5).astype(jnp.float32)

    l2 = jax.block_until_ready(
        focal_loss(xb, tb, alpha=(0.25, 0.75), gamma=1.5, reduction='sum', max_blk_rows=16))
    r2 = jax.block_until_ready(_reference(xb, tb, alpha=(0.25, 0.75), gamma=1.5, reduction='sum'))
    np.testing.assert_allclose(np.asarray(l2), np.asarray(r2), rtol=1e-4, atol=1e-4)

    l3 = jax.block_until_ready(focal_loss(xb, tb, binary_targets=True, max_blk_rows=16))
    r3 = jax.block_until_ready(_reference(xb, tb))
    np.testing.assert_allclose(np.asarray(l3), np.asarray(r3), rtol=1e-4, atol=1e-6)

    print("KERNEL_OK")
</pallas_src>

<mosaic_0001>
module attributes {stable_mosaic.version = 11 : i64} {
  func.func @_focal_kernel(%arg0: i32, %arg1: i32, %arg2: memref<16x128xf32, #tpu.memory_space<vmem>>, %arg3: memref<16x128xf32, #tpu.memory_space<vmem>>, %arg4: memref<1x8x128xf32, #tpu.memory_space<vmem>>) attributes {dimension_semantics = [#tpu.dimension_semantics<parallel>, #tpu.dimension_semantics<arbitrary>], iteration_bounds = array<i64: 1, 1>, scalar_prefetch = 0 : i64, scratch_operands = 0 : i64, tpu.core_type = #tpu.core_type<tc>, window_params = [{transform_indices = @transform_0, window_bounds = array<i64: 16, 128>}, {transform_indices = @transform_1, window_bounds = array<i64: 16, 128>}, {transform_indices = @transform_2, window_bounds = array<i64: 1, 8, 128>}]} {
    %c0_i32 = arith.constant 0 : i32
    %0 = arith.cmpi eq, %arg1, %c0_i32 : i32
    %1 = arith.extui %0 : i1 to i32
    %c0_i32_0 = arith.constant 0 : i32
    %2 = arith.cmpi ne, %1, %c0_i32_0 : i32
    scf.if %2 {
      %cst_16 = arith.constant 0.000000e+00 : f32
      %31 = vector.broadcast %cst_16 : f32 to vector<1x8x128xf32>
      %c0_17 = arith.constant 0 : index
      %c0_18 = arith.constant 0 : index
      %c0_19 = arith.constant 0 : index
      %32 = vector.load %arg4[%c0_17, %c0_18, %c0_19] : memref<1x8x128xf32, #tpu.memory_space<vmem>>, vector<1x8x128xf32>
      tpu.vector_store %arg4[%c0_17, %c0_18, %c0_19], %31 {strides = array<i32>} : memref<1x8x128xf32, #tpu.memory_space<vmem>>, vector<1x8x128xf32>,
    } else {
    }
    %c0 = arith.constant 0 : index
    %c0_1 = arith.constant 0 : index
    %3 = vector.load %arg2[%c0, %c0_1] : memref<16x128xf32, #tpu.memory_space<vmem>>, vector<16x128xf32>
    %c0_2 = arith.constant 0 : index
    %c0_3 = arith.constant 0 : index
    %4 = vector.load %arg3[%c0_2, %c0_3] : memref<16x128xf32, #tpu.memory_space<vmem>>, vector<16x128xf32>
    %5 = math.log %3 : vector<16x128xf32>
    %cst = arith.constant -1.000000e+02 : f32
    %6 = vector.broadcast %cst : f32 to vector<16x128xf32>
    %7 = arith.maximumf %5, %6 : vector<16x128xf32>
    %cst_4 = arith.constant 1.000000e+00 : f32
    %8 = vector.broadcast %cst_4 : f32 to vector<16x128xf32>
    %9 = arith.subf %8, %3 : vector<16x128xf32>
    %10 = math.log %9 : vector<16x128xf32>
    %cst_5 = arith.constant -1.000000e+02 : f32
    %11 = vector.broadcast %cst_5 : f32 to vector<16x128xf32>
    %12 = arith.maximumf %10, %11 : vector<16x128xf32>
    %13 = arith.subf %7, %12 : vector<16x128xf32>
    %14 = arith.mulf %4, %13 : vector<16x128xf32>
    %15 = arith.addf %12, %14 : vector<16x128xf32>
    %cst_6 = arith.constant 0.000000e+00 : f32
    %16 = vector.broadcast %cst_6 : f32 to vector<16x128xf32>
    %17 = arith.subf %16, %15 : vector<16x128xf32>
    %cst_7 = arith.constant 0.000000e+00 : f32
    %18 = vector.broadcast %cst_7 : f32 to vector<16x128xf32>
    %19 = arith.subf %18, %17 : vector<16x128xf32>
    %20 = math.exp %19 : vector<16x128xf32>
    %cst_8 = arith.constant 1.000000e+00 : f32
    %21 = vector.broadcast %cst_8 : f32 to vector<16x128xf32>
    %22 = arith.subf %21, %20 : vector<16x128xf32>
    %23 = arith.mulf %22, %22 : vector<16x128xf32>
    %24 = arith.mulf %23, %17 : vector<16x128xf32>
    %c0_9 = arith.constant 0 : index
    %c0_10 = arith.constant 0 : index
    %c0_11 = arith.constant 0 : index
    %25 = vector.load %arg4[%c0_9, %c0_10, %c0_11] : memref<1x8x128xf32, #tpu.memory_space<vmem>>, vector<1x8x128xf32>
    %26 = vector.shape_cast %24 : vector<16x128xf32> to vector<2x8x128xf32>
    %cst_12 = arith.constant dense<0.000000e+00> : vector<8x128xf32>
    %27 = vector.multi_reduction <add>, %26, %cst_12 [0] : vector<2x8x128xf32> to vector<8x128xf32>
    %28 = vector.shape_cast %27 : vector<8x128xf32> to vector<1x8x128xf32>
    %29 = arith.addf %25, %28 : vector<1x8x128xf32>
    %c0_13 = arith.constant 0 : index
    %c0_14 = arith.constant 0 : index
    %c0_15 = arith.constant 0 : index
    %30 = vector.load %arg4[%c0_13, %c0_14, %c0_15] : memref<1x8x128xf32, #tpu.memory_space<vmem>>, vector<1x8x128xf32>
    tpu.vector_store %arg4[%c0_13, %c0_14, %c0_15], %29 {strides = array<i32>} : memref<1x8x128xf32, #tpu.memory_space<vmem>>, vector<1x8x128xf32>,
    return
  }
  func.func @transform_0(%arg0: i32, %arg1: i32) -> (i32, i32) {
    %c1_i32 = arith.constant 1 : i32
    %0 = arith.muli %arg1, %c1_i32 : i32
    %1 = arith.addi %0, %arg0 : i32
    %c0_i32 = arith.constant 0 : i32
    %c0_i32_0 = arith.constant 0 : i32
    return %1, %c0_i32 : i32, i32
  }
  func.func @transform_1(%arg0: i32, %arg1: i32) -> (i32, i32) {
    %c1_i32 = arith.constant 1 : i32
    %0 = arith.muli %arg1, %c1_i32 : i32
    %1 = arith.addi %0, %arg0 : i32
    %c0_i32 = arith.constant 0 : i32
    %c0_i32_0 = arith.constant 0 : i32
    return %1, %c0_i32 : i32, i32
  }
  func.func @transform_2(%arg0: i32, %arg1: i32) -> (i32, i32, i32) {
    %c0_i32 = arith.constant 0 : i32
    %c0_i32_0 = arith.constant 0 : i32
    %c0_i32_1 = arith.constant 0 : i32
    return %arg0, %c0_i32, %c0_i32_0 : i32, i32, i32
  }
}

</mosaic_0001>

<bundles_post_ra>
// kernel: tpu_custom_call.1
= control target key start
LH: loop header
LB: loop body
LE: loop exit
PB: predicated region body
PF: predicated region fallthrough
CT: control target
= control target key end

     0   :  { %7 = vsyncpa [#allocation3], 0  ;;  %s261_s0 = inlined_call_operand.hbm [shape: f32[16,128], index: 0, kind: input, shape index: {}]   ;;  %s262_s1 = inlined_call_operand.hbm [shape: f32[16,128], index: 1, kind: input, shape index: {}]   ;;  %s263_s2 = inlined_call_operand.hbm [shape: f32[1,8,128], index: 2, kind: output, shape index: {}]  }
   0x1   :  { %8 = vsyncpa [#allocation6], 0 }
   0x2   :  { %9 = vsyncpa [#allocation4], 0  ;;  %s205_s9 = smov [#allocation2]   ;;  %s133_s13 = scalar_lea.hbm %s261_s0, 256 }
   0x3   :  { %s19_s10 = sshll.u32 %s205_s9, 4  ;;  %p134_p0 = scmp.ne.s32.totalorder %s261_s0, %s133_s13  ;;  %s20_s10 = int_to_ptr.vmem [resolvable:$true] %s19_s10 }
   0x4   :  { %p137_p1 = scmp.lt.u32.totalorder %s133_s13, %s261_s0 }
   0x6   :  { %p139_p2 = pnand %p137_p1, %p134_p0 }
   0x8   :  { %142 = shalt.err (!%p139_p2)
}
   0x9   :  { %s143_s18 = scalar_lea.vmem %s20_s10, 256  ;;  %p148_p4 = scmp.lt.s32.totalorder %s20_s10, %s20_s10 }
   0xa   :  { %p144_p3 = scmp.ne.s32.totalorder %s20_s10, %s143_s18  ;;  %p149_p5 = scmp.lt.s32.totalorder %s143_s18, %s143_s18 }
   0xc   :  { %p150_p6 = por %p149_p5, %p148_p4 }
   0xe   :  { %p151_p7 = pnand %p150_p6, %p144_p3 }
  0x10   :  { %154 = shalt.err (!%p151_p7)
}
  0x11   :  { %s206_s19 = smov 128   ;;  %s207_s20 = smov 8  }
  0x12   :  { %25 = dma.hbm_to_vmem [thread:$0]  %s261_s0, 256, %s20_s10, [#allocation3], %s206_s19, %s206_s19, %s207_s20  }
  0x13   :  { %s208_s23 = smov [#allocation5]   ;;  %s155_s27 = scalar_lea.hbm %s262_s1, 256 }
  0x14   :  { %s35_s24 = sshll.u32 %s208_s23, 4  ;;  %p156_p8 = scmp.ne.s32.totalorder %s262_s1, %s155_s27  ;;  %s36_s24 = int_to_ptr.vmem [resolvable:$true] %s35_s24 }
  0x15   :  { %p159_p9 = scmp.lt.u32.totalorder %s155_s27, %s262_s1 }
  0x17   :  { %p161_p10 = pnand %p159_p9, %p156_p8 }
  0x19   :  { %164 = shalt.err (!%p161_p10)
}
  0x1a   :  { %s165_s4 = scalar_lea.vmem %s36_s24, 256  ;;  %p170_p12 = scmp.lt.s32.totalorder %s36_s24, %s36_s24 }
  0x1b   :  { %p166_p11 = scmp.ne.s32.totalorder %s36_s24, %s165_s4  ;;  %p171_p13 = scmp.lt.s32.totalorder %s165_s4, %s165_s4 }
  0x1d   :  { %p172_p0 = por %p171_p13, %p170_p12 }
  0x1f   :  { %p173_p1 = pnand %p172_p0, %p166_p11 }
  0x21   :  { %176 = shalt.err (!%p173_p1)
}
  0x22   :  { %41 = dma.hbm_to_vmem [thread:$0]  %s262_s1, 256, %s36_s24, [#allocation6], %s206_s19, %s206_s19, %s207_s20  }
  0x23   :  { %199 = dma.done.wait [#allocation3], 256  }
  0x24   :  { %200 = vsyncadd [#allocation3], 4294967040 }
  0x25   :  { %201 = dma.done.wait [#allocation6], 256  }
  0x26   :  { %202 = vsyncadd [#allocation6], 4294967040  ;;  %v57_v0 = vld [vmem:[#allocation2] sm:$0xff]  ;;  %v58_v1 = vld [vmem:[#allocation2 + $0x8] sm:$0xff]  ;;  %s209_s1 = smov [#allocation7]  }
  0x27   :  { %121 = vlog2.f32 %v57_v0  ;;  %v67_v2 = vsub.f32 1.0, %v57_v0  ;;  %v68_v3 = vsub.f32 1.0, %v58_v1  ;;  %v59_v15 = vld [vmem:[#allocation5] sm:$0xff]  ;;  %v60_v17 = vld [vmem:[#allocation5 + $0x8] sm:$0xff]  ;;  %s105_s6 = sshll.u32 %s209_s1, 4  ;;  %s106_s6 = int_to_ptr.vmem [resolvable:$true] %s105_s6 }
  0x28   :  { %123 = vlog2.f32 %v58_v1  ;;  %s177_s7 = scalar_lea.vmem %s106_s6, 128  ;;  %p182_p3 = scmp.lt.s32.totalorder %s106_s6, %s106_s6 }
  0x29   :  { %125 = vlog2.f32 %v67_v2  ;;  %p178_p2 = scmp.ne.s32.totalorder %s106_s6, %s177_s7  ;;  %p183_p4 = scmp.lt.s32.totalorder %s177_s7, %s177_s7 }
  0x2a   :  { %127 = vlog2.f32 %v68_v3 }
  0x2b   :  { %p184_p5 = por %p183_p4, %p182_p3 }
  0x2d   :  { %p185_p6 = pnand %p184_p5, %p178_p2 }
  0x31   :  { %v122_v4 = vpop.eup %121 }
  0x32   :  { %v124_v5 = vpop.eup %123  ;;  %v62_v6 = vmul.f32 0.6931472, %v122_v4 }
  0x33   :  { %v126_v7 = vpop.eup %125  ;;  %v64_v8 = vmul.f32 0.6931472, %v124_v5 }
  0x34   :  { %v128_v9 = vpop.eup %127  ;;  %v65_v10 = vmax.f32 %v62_v6, -100.0  ;;  %v70_v11 = vmul.f32 0.6931472, %v126_v7 }
  0x35   :  { %v66_v12 = vmax.f32 %v64_v8, -100.0  ;;  %v72_v13 = vmul.f32 0.6931472, %v128_v9 }
  0x36   :  { %v73_v14 = vmax.f32 %v70_v11, -100.0 }
  0x37   :  { %v74_v16 = vmax.f32 %v72_v13, -100.0 }
  0x38   :  { %v75_v18 = vsub.f32 %v65_v10, %v73_v14 }
  0x39   :  { %v76_v19 = vsub.f32 %v66_v12, %v74_v16 }
  0x3a   :  { %v77_v20 = vmul.f32 %v75_v18, %v59_v15 }
  0x3b   :  { %v78_v21 = vmul.f32 %v76_v19, %v60_v17 }
  0x3c   :  { %v79_v22 = vadd.f32 %v77_v20, %v73_v14 }
  0x3d   :  { %v80_v23 = vadd.f32 %v78_v21, %v74_v16 }
  0x3e   :  { %v81_v24 = vsub.f32 0.0, %v79_v22 }
  0x3f   :  { %v82_v25 = vsub.f32 0.0, %v80_v23 }
  0x40   :  { %v83_v26 = vsub.f32 0.0, %v81_v24 }
  0x41   :  { %v84_v27 = vsub.f32 0.0, %v82_v25 }
  0x42   :  { %v85_v28 = vmul.f32 1.442695, %v83_v26 }
  0x43   :  { %v87_v29 = vmul.f32 1.442695, %v84_v27 }
  0x44   :  { %129 = vpow2.f32 %v85_v28 }
  0x45   :  { %131 = vpow2.f32 %v87_v29 }
  0x4e   :  { %v130_v30 = vpop.eup %129 }
  0x4f   :  { %v132_v31 = vpop.eup %131  ;;  %v89_v32 = vsub.f32 1.0, %v130_v30 }
  0x50   :  { %v90_v33 = vsub.f32 1.0, %v132_v31 }
  0x51   :  { %v91_v34 = vmul.f32 %v89_v32, %v89_v32 }
  0x52   :  { %v92_v35 = vmul.f32 %v90_v33, %v90_v33 }
  0x53   :  { %v93_v36 = vmul.f32 %v91_v34, %v81_v24 }
  0x54   :  { %v94_v37 = vmul.f32 %v92_v35, %v82_v25 }
  0x56   :  { %v96_v38 = vadd.f32 %v94_v37, %v93_v36 }
  0x58   :  { %98 = vst [vmem:[#allocation7] sm:$0xff] %v96_v38 }
  0x59   :  { %188 = shalt.err (!%p185_p6)
}
  0x5a   :  { %s189_s10 = scalar_lea.hbm %s263_s2, 128 }
  0x5b   :  { %p190_p7 = scmp.ne.s32.totalorder %s263_s2, %s189_s10  ;;  %p193_p8 = scmp.lt.u32.totalorder %s189_s10, %s263_s2 }
  0x5d   :  { %p195_p9 = pnand %p193_p8, %p190_p7 }
  0x5f   :  { %198 = shalt.err (!%p195_p9)
}
  0x60   :  { %108 = dma.vmem_to_hbm [thread:$0]  %s106_s6, 128, %s263_s2, [#allocation4]  }
  0x61   :  { %203 = dma.done.wait [#allocation4], 128  }
  0x62   :  { %204 = vsyncadd [#allocation4], 4294967168 }
  0x63   :  { %112 = vsyncpa [#allocation3], 1 }
  0x64   :  { %113 = vsyncpa [#allocation6], 1 }
  0x65   :  { %114 = vsyncpa [#allocation4], 1 }

</bundles_post_ra>
